<compile_context>
chip_gen: v7x
topology: tpu7x:2x2x1
jax: 0.10.0
libtpu: 0.0.40
codegen_flags: <defaults>
</compile_context>

<pallas_src>
import jax
import jax.numpy as jnp
from jax.experimental import pallas as pl
from jax.experimental.pallas import tpu as pltpu

# ----- model dimensions (analogous to TwoTowerNetwork.__init__ args) -----
STATE_DIM = 10                       # state_input_dim
ACTION_DIM = 6                       # action_input_dim
X_DIM = STATE_DIM + ACTION_DIM       # 16
STATE_OUT = 32                       # state_output_dim
ACTION_OUT = 32                      # action_output_dim
FEAT_DIM = STATE_OUT + ACTION_OUT    # 64
S_HID = 64                           # state_hidden_dims = [64]
A_HID = 64                           # action_hidden_dims = [64]
H1_DIM = S_HID + A_HID               # 128
I_HID = 64                           # hidden_dims = [64]
OUT_DIM = 1                          # output_dim

MAX_TILE_B = 2048                    # per-step overhead (~0.35 us) drops to ~5-10%
MIN_SPLIT_B = 1024                   # above this, force >=2 tiles for v7x megacore
VMEM_LIMIT_BYTES = 32 * 1024 * 1024  # explicit: v5e scoped default is only 16 MiB


def _round_up(x: int, m: int) -> int:
    return (x + m - 1) // m * m


def _choose_tile(batch: int) -> int:
    """Balanced batch tile: big, 8-aligned, no wasteful tail, >=2 tiles when large."""
    num_tiles = -(-batch // MAX_TILE_B)
    if batch >= MIN_SPLIT_B:
        num_tiles = max(num_tiles, 2)          # keep both v7x TensorCores busy
    return _round_up(max(-(-batch // num_tiles), 8), 8)


# ----------------------------- kernel ---------------------------------------
def two_tower_fused_kernel(x_ref,
                           w1_ref, b1_ref,    # fused tower layer 1 (block-diag, bf16/f32)
                           w2_ref, b2_ref,    # fused tower layer 2 (block-diag, bf16/f32)
                           w3_ref, b3_ref,    # interaction layer 1 (bf16/f32)
                           w4_ref, b4_ref,    # interaction head as a (1, I_HID) row (f32)
                           q_ref):
    # bf16 operands on the MXU, f32 accumulation; bias add + ReLU in f32 (VPU).
    x = x_ref[...].astype(jnp.bfloat16)                              # (TB, 16)

    h1 = jnp.dot(x, w1_ref[...], preferred_element_type=jnp.float32) + b1_ref[...]
    h1 = jnp.maximum(h1, 0.0)                                        # (TB, 128) = [hs|ha]

    feat = jnp.dot(h1.astype(jnp.bfloat16), w2_ref[...],
                   preferred_element_type=jnp.float32) + b2_ref[...]  # (TB, 64) = [sf|af]

    h3 = jnp.dot(feat.astype(jnp.bfloat16), w3_ref[...],
                 preferred_element_type=jnp.float32) + b3_ref[...]
    h3 = jnp.maximum(h3, 0.0)                                        # (TB, 64)

    # Head (N=1) off the MXU: VPU broadcast multiply + XLU lane-axis reduce.
    q = jnp.sum(h3 * w4_ref[...], axis=-1, keepdims=True) + b4_ref[...]
    q_ref[...] = q                                                   # (TB, 1)


# ------------------------- parameter fusion ---------------------------------
def _fuse_params(p):
    """Block-diagonal tower fusion (exact, zero cross-blocks); MXU weights in bf16."""
    w1 = jnp.zeros((X_DIM, H1_DIM), jnp.float32)
    w1 = w1.at[:STATE_DIM, :S_HID].set(p["ws1"])
    w1 = w1.at[STATE_DIM:, S_HID:].set(p["wa1"])
    b1 = jnp.concatenate([p["bs1"], p["ba1"]], axis=-1)             # (1, 128) f32

    w2 = jnp.zeros((H1_DIM, FEAT_DIM), jnp.float32)
    w2 = w2.at[:S_HID, :STATE_OUT].set(p["ws2"])
    w2 = w2.at[S_HID:, STATE_OUT:].set(p["wa2"])
    b2 = jnp.concatenate([p["bs2"], p["ba2"]], axis=-1)             # (1, 64) f32

    w4 = p["wi2"].reshape(1, I_HID)                                  # head as (1, 64) row, f32

    return (w1.astype(jnp.bfloat16), b1,
            w2.astype(jnp.bfloat16), b2,
            p["wi1"].astype(jnp.bfloat16), p["bi1"],
            w4, p["bi2"])


# ----------------------------- wrapper ---------------------------------------
@jax.jit
def two_tower_forward(state_action, params):
    """state_action: (B, STATE_DIM + ACTION_DIM) float32 -> (B,) float32."""
    B = state_action.shape[0]
    fused = _fuse_params(params)

    tile_b = _choose_tile(B)
    b_pad = _round_up(B, tile_b)
    x = state_action
    if b_pad != B:
        x = jnp.pad(x, ((0, b_pad - B), (0, 0)))

    grid = (b_pad // tile_b,)
    const = lambda i: (0, 0)   # weights/biases: fetched once, VMEM-resident

    q = pl.pallas_call(
        two_tower_fused_kernel,
        out_shape=jax.ShapeDtypeStruct((b_pad, OUT_DIM), jnp.float32),
        grid=grid,
        in_specs=[
            pl.BlockSpec((tile_b, X_DIM), lambda i: (i, 0)),        # x tile
            pl.BlockSpec((X_DIM, H1_DIM), const),                   # W1 (bf16)
            pl.BlockSpec((1, H1_DIM), const),                       # b1 (f32)
            pl.BlockSpec((H1_DIM, FEAT_DIM), const),                # W2 (bf16)
            pl.BlockSpec((1, FEAT_DIM), const),                     # b2 (f32)
            pl.BlockSpec((FEAT_DIM, I_HID), const),                 # W3 (bf16)
            pl.BlockSpec((1, I_HID), const),                        # b3 (f32)
            pl.BlockSpec((1, I_HID), const),                        # W4 row (f32)
            pl.BlockSpec((1, OUT_DIM), const),                      # b4 (f32)
        ],
        out_specs=pl.BlockSpec((tile_b, OUT_DIM), lambda i: (i, 0)),
        compiler_params=pltpu.CompilerParams(
            dimension_semantics=("parallel",),                      # v7x megacore
            vmem_limit_bytes=VMEM_LIMIT_BYTES,
        ),
    )(x, *fused)

    # action batch was 2-D => PyTorch does .squeeze(-1).squeeze(-1) -> (B,)
    return q[:B, 0]


# ----- deterministic parameter init (xavier-uniform weights, small-uniform biases) -----
def _xavier(key, fan_in, fan_out):
    bound = (6.0 / (fan_in + fan_out)) ** 0.5
    return jax.random.uniform(key, (fan_in, fan_out), jnp.float32, -bound, bound)


def _bias(key, fan_in, fan_out):
    bound = 1.0 / (fan_in ** 0.5)
    return jax.random.uniform(key, (1, fan_out), jnp.float32, -bound, bound)


def init_params(key):
    ks = jax.random.split(key, 12)
    return dict(
        ws1=_xavier(ks[0], STATE_DIM, S_HID),  bs1=_bias(ks[1], STATE_DIM, S_HID),
        ws2=_xavier(ks[2], S_HID, STATE_OUT),  bs2=_bias(ks[3], S_HID, STATE_OUT),
        wa1=_xavier(ks[4], ACTION_DIM, A_HID), ba1=_bias(ks[5], ACTION_DIM, A_HID),
        wa2=_xavier(ks[6], A_HID, ACTION_OUT), ba2=_bias(ks[7], A_HID, ACTION_OUT),
        wi1=_xavier(ks[8], STATE_OUT + ACTION_OUT, I_HID),
        bi1=_bias(ks[9], STATE_OUT + ACTION_OUT, I_HID),
        wi2=_xavier(ks[10], I_HID, OUT_DIM),   bi2=_bias(ks[11], I_HID, OUT_DIM),
    )


def two_tower_reference(state_action, p):
    """Pure-JAX f32 reference of the same forward pass (unfused, for verification)."""
    state = state_action[:, :STATE_DIM]
    action = state_action[:, STATE_DIM:]
    sf = jnp.maximum(state @ p["ws1"] + p["bs1"], 0.0) @ p["ws2"] + p["bs2"]
    af = jnp.maximum(action @ p["wa1"] + p["ba1"], 0.0) @ p["wa2"] + p["ba2"]
    x = jnp.concatenate([sf, af], axis=-1)
    q = jnp.maximum(x @ p["wi1"] + p["bi1"], 0.0) @ p["wi2"] + p["bi2"]
    return q[:, 0]


if __name__ == "__main__":
    key = jax.random.PRNGKey(0)
    k_params, k_x1, k_x2, k_x3 = jax.random.split(key, 4)
    params = init_params(k_params)

    # bf16 MXU operands => compare against the f32 reference with loosened tolerance.
    ATOL = RTOL = 3e-2

    # Small batch (single tile, grid of 1).
    B_small = 16
    x_small = jax.random.normal(k_x1, (B_small, X_DIM), jnp.float32)
    q_small = jax.block_until_ready(two_tower_forward(x_small, params))
    assert q_small.shape == (B_small,)
    assert jnp.allclose(q_small, two_tower_reference(x_small, params), atol=ATOL, rtol=RTOL)

    # Medium, non-8-multiple batch: exercises tail padding (600 -> 608, single tile).
    B_mid = 600
    x_mid = jax.random.normal(k_x2, (B_mid, X_DIM), jnp.float32)
    q_mid = jax.block_until_ready(two_tower_forward(x_mid, params))
    assert q_mid.shape == (B_mid,)
    assert jnp.allclose(q_mid, two_tower_reference(x_mid, params), atol=ATOL, rtol=RTOL)

    # Large batch: exercises the multi-tile grid path (balanced tiles, grid >= 2).
    B_big = 2500
    x_big = jax.random.normal(k_x3, (B_big, X_DIM), jnp.float32)
    q_big = jax.block_until_ready(two_tower_forward(x_big, params))
    assert q_big.shape == (B_big,)
    assert jnp.allclose(q_big, two_tower_reference(x_big, params), atol=ATOL, rtol=RTOL)

    print("KERNEL_OK")
</pallas_src>

<mosaic_0001>
module attributes {stable_mosaic.version = 11 : i64} {
  func.func @two_tower_fused_kernel(%arg0: i32, %arg1: memref<16x16xf32, #tpu.memory_space<vmem>>, %arg2: memref<16x128xbf16, #tpu.memory_space<vmem>>, %arg3: memref<1x128xf32, #tpu.memory_space<vmem>>, %arg4: memref<128x64xbf16, #tpu.memory_space<vmem>>, %arg5: memref<1x64xf32, #tpu.memory_space<vmem>>, %arg6: memref<64x64xbf16, #tpu.memory_space<vmem>>, %arg7: memref<1x64xf32, #tpu.memory_space<vmem>>, %arg8: memref<1x64xf32, #tpu.memory_space<vmem>>, %arg9: memref<1x1xf32, #tpu.memory_space<vmem>>, %arg10: memref<16x1xf32, #tpu.memory_space<vmem>>) attributes {dimension_semantics = [#tpu.dimension_semantics<parallel>], iteration_bounds = array<i64: 1>, scalar_prefetch = 0 : i64, scratch_operands = 0 : i64, tpu.core_type = #tpu.core_type<tc>, window_params = [{transform_indices = @transform_0, window_bounds = array<i64: 16, 16>}, {pipeline_mode = #tpu.pipeline_mode<synchronous>, transform_indices = @transform_1, window_bounds = array<i64: 16, 128>}, {pipeline_mode = #tpu.pipeline_mode<synchronous>, transform_indices = @transform_2, window_bounds = array<i64: 1, 128>}, {pipeline_mode = #tpu.pipeline_mode<synchronous>, transform_indices = @transform_3, window_bounds = array<i64: 128, 64>}, {pipeline_mode = #tpu.pipeline_mode<synchronous>, transform_indices = @transform_4, window_bounds = array<i64: 1, 64>}, {pipeline_mode = #tpu.pipeline_mode<synchronous>, transform_indices = @transform_5, window_bounds = array<i64: 64, 64>}, {pipeline_mode = #tpu.pipeline_mode<synchronous>, transform_indices = @transform_6, window_bounds = array<i64: 1, 64>}, {pipeline_mode = #tpu.pipeline_mode<synchronous>, transform_indices = @transform_7, window_bounds = array<i64: 1, 64>}, {pipeline_mode = #tpu.pipeline_mode<synchronous>, transform_indices = @transform_8, window_bounds = array<i64: 1, 1>}, {transform_indices = @transform_9, window_bounds = array<i64: 16, 1>}]} {
    %c0 = arith.constant 0 : index
    %c0_0 = arith.constant 0 : index
    %0 = vector.load %arg1[%c0, %c0_0] : memref<16x16xf32, #tpu.memory_space<vmem>>, vector<16x16xf32>
    %1 = arith.truncf %0 : vector<16x16xf32> to vector<16x16xbf16>
    %c0_1 = arith.constant 0 : index
    %c0_2 = arith.constant 0 : index
    %2 = vector.load %arg2[%c0_1, %c0_2] : memref<16x128xbf16, #tpu.memory_space<vmem>>, vector<16x128xbf16>
    %cst = arith.constant dense<0.000000e+00> : vector<16x128xf32>
    %3 = tpu.matmul %1, %2, %cst {dimension_numbers = #tpu.dot_dimension_numbers<[1], [0], [0], [1], [0, 0, 1, 1], [], []>} : vector<16x16xbf16>, vector<16x128xbf16>, vector<16x128xf32> -> vector<16x128xf32>
    %c0_3 = arith.constant 0 : index
    %c0_4 = arith.constant 0 : index
    %4 = vector.load %arg3[%c0_3, %c0_4] : memref<1x128xf32, #tpu.memory_space<vmem>>, vector<1x128xf32>
    %5 = vector.broadcast %4 : vector<1x128xf32> to vector<16x128xf32>
    %6 = arith.addf %3, %5 : vector<16x128xf32>
    %cst_5 = arith.constant 0.000000e+00 : f32
    %7 = vector.broadcast %cst_5 : f32 to vector<16x128xf32>
    %8 = arith.maximumf %6, %7 : vector<16x128xf32>
    %9 = arith.truncf %8 : vector<16x128xf32> to vector<16x128xbf16>
    %c0_6 = arith.constant 0 : index
    %c0_7 = arith.constant 0 : index
    %10 = vector.load %arg4[%c0_6, %c0_7] : memref<128x64xbf16, #tpu.memory_space<vmem>>, vector<128x64xbf16>
    %cst_8 = arith.constant dense<0.000000e+00> : vector<16x64xf32>
    %11 = tpu.matmul %9, %10, %cst_8 {dimension_numbers = #tpu.dot_dimension_numbers<[1], [0], [0], [1], [0, 0, 1, 1], [], []>} : vector<16x128xbf16>, vector<128x64xbf16>, vector<16x64xf32> -> vector<16x64xf32>
    %c0_9 = arith.constant 0 : index
    %c0_10 = arith.constant 0 : index
    %12 = vector.load %arg5[%c0_9, %c0_10] : memref<1x64xf32, #tpu.memory_space<vmem>>, vector<1x64xf32>
    %13 = vector.broadcast %12 : vector<1x64xf32> to vector<16x64xf32>
    %14 = arith.addf %11, %13 : vector<16x64xf32>
    %15 = arith.truncf %14 : vector<16x64xf32> to vector<16x64xbf16>
    %c0_11 = arith.constant 0 : index
    %c0_12 = arith.constant 0 : index
    %16 = vector.load %arg6[%c0_11, %c0_12] : memref<64x64xbf16, #tpu.memory_space<vmem>>, vector<64x64xbf16>
    %cst_13 = arith.constant dense<0.000000e+00> : vector<16x64xf32>
    %17 = tpu.matmul %15, %16, %cst_13 {dimension_numbers = #tpu.dot_dimension_numbers<[1], [0], [0], [1], [0, 0, 1, 1], [], []>} : vector<16x64xbf16>, vector<64x64xbf16>, vector<16x64xf32> -> vector<16x64xf32>
    %c0_14 = arith.constant 0 : index
    %c0_15 = arith.constant 0 : index
    %18 = vector.load %arg7[%c0_14, %c0_15] : memref<1x64xf32, #tpu.memory_space<vmem>>, vector<1x64xf32>
    %19 = vector.broadcast %18 : vector<1x64xf32> to vector<16x64xf32>
    %20 = arith.addf %17, %19 : vector<16x64xf32>
    %cst_16 = arith.constant 0.000000e+00 : f32
    %21 = vector.broadcast %cst_16 : f32 to vector<16x64xf32>
    %22 = arith.maximumf %20, %21 : vector<16x64xf32>
    %c0_17 = arith.constant 0 : index
    %c0_18 = arith.constant 0 : index
    %23 = vector.load %arg8[%c0_17, %c0_18] : memref<1x64xf32, #tpu.memory_space<vmem>>, vector<1x64xf32>
    %24 = vector.broadcast %23 : vector<1x64xf32> to vector<16x64xf32>
    %25 = arith.mulf %22, %24 : vector<16x64xf32>
    %cst_19 = arith.constant dense<0.000000e+00> : vector<16xf32>
    %26 = vector.multi_reduction <add>, %25, %cst_19 [1] : vector<16x64xf32> to vector<16xf32>
    %27 = vector.shape_cast %26 : vector<16xf32> to vector<16x1xf32>
    %c0_20 = arith.constant 0 : index
    %c0_21 = arith.constant 0 : index
    %28 = vector.load %arg9[%c0_20, %c0_21] : memref<1x1xf32, #tpu.memory_space<vmem>>, vector<1x1xf32>
    %29 = vector.broadcast %28 : vector<1x1xf32> to vector<16x1xf32>
    %30 = arith.addf %27, %29 : vector<16x1xf32>
    %c0_22 = arith.constant 0 : index
    %c0_23 = arith.constant 0 : index
    %31 = vector.load %arg10[%c0_22, %c0_23] : memref<16x1xf32, #tpu.memory_space<vmem>>, vector<16x1xf32>
    tpu.vector_store %arg10[%c0_22, %c0_23], %30 {strides = array<i32>} : memref<16x1xf32, #tpu.memory_space<vmem>>, vector<16x1xf32>,
    return
  }
  func.func @transform_0(%arg0: i32) -> (i32, i32) {
    %c0_i32 = arith.constant 0 : i32
    %c0_i32_0 = arith.constant 0 : i32
    return %arg0, %c0_i32 : i32, i32
  }
  func.func @transform_1(%arg0: i32) -> (i32, i32) {
    %c0_i32 = arith.constant 0 : i32
    %c0_i32_0 = arith.constant 0 : i32
    %c0_i32_1 = arith.constant 0 : i32
    return %c0_i32, %c0_i32_0 : i32, i32
  }
  func.func @transform_2(%arg0: i32) -> (i32, i32) {
    %c0_i32 = arith.constant 0 : i32
    %c0_i32_0 = arith.constant 0 : i32
    %c0_i32_1 = arith.constant 0 : i32
    return %c0_i32, %c0_i32_0 : i32, i32
  }
  func.func @transform_3(%arg0: i32) -> (i32, i32) {
    %c0_i32 = arith.constant 0 : i32
    %c0_i32_0 = arith.constant 0 : i32
    %c0_i32_1 = arith.constant 0 : i32
    return %c0_i32, %c0_i32_0 : i32, i32
  }
  func.func @transform_4(%arg0: i32) -> (i32, i32) {
    %c0_i32 = arith.constant 0 : i32
    %c0_i32_0 = arith.constant 0 : i32
    %c0_i32_1 = arith.constant 0 : i32
    return %c0_i32, %c0_i32_0 : i32, i32
  }
  func.func @transform_5(%arg0: i32) -> (i32, i32) {
    %c0_i32 = arith.constant 0 : i32
    %c0_i32_0 = arith.constant 0 : i32
    %c0_i32_1 = arith.constant 0 : i32
    return %c0_i32, %c0_i32_0 : i32, i32
  }
  func.func @transform_6(%arg0: i32) -> (i32, i32) {
    %c0_i32 = arith.constant 0 : i32
    %c0_i32_0 = arith.constant 0 : i32
    %c0_i32_1 = arith.constant 0 : i32
    return %c0_i32, %c0_i32_0 : i32, i32
  }
  func.func @transform_7(%arg0: i32) -> (i32, i32) {
    %c0_i32 = arith.constant 0 : i32
    %c0_i32_0 = arith.constant 0 : i32
    %c0_i32_1 = arith.constant 0 : i32
    return %c0_i32, %c0_i32_0 : i32, i32
  }
  func.func @transform_8(%arg0: i32) -> (i32, i32) {
    %c0_i32 = arith.constant 0 : i32
    %c0_i32_0 = arith.constant 0 : i32
    %c0_i32_1 = arith.constant 0 : i32
    return %c0_i32, %c0_i32_0 : i32, i32
  }
  func.func @transform_9(%arg0: i32) -> (i32, i32) {
    %c0_i32 = arith.constant 0 : i32
    %c0_i32_0 = arith.constant 0 : i32
    return %arg0, %c0_i32 : i32, i32
  }
}

</mosaic_0001>

<bundles_post_ra>
// kernel: two_tower_forward.1
= control target key start
LH: loop header
LB: loop body
LE: loop exit
PB: predicated region body
PF: predicated region fallthrough
CT: control target
= control target key end

     0   :  { %v420_v0 = vmov 0.0   ;;  %vm421_vm0 = vmmov 0   ;;  %vm53_vm1 = vcmask 130048   ;;  %vm253_vm2 = vcmask 523264   ;;  %s541_s1 = inlined_call_operand.vmem [shape: bf16[16,128], index: 1, kind: input, shape index: {}]   ;;  %s542_s0 = inlined_call_operand.vmem [shape: f32[16,16], index: 0, kind: input, shape index: {}]   ;;  %s543_s3 = inlined_call_operand.vmem [shape: bf16[128,64], index: 3, kind: input, shape index: {}]   ;;  %s544_s5 = inlined_call_operand.vmem [shape: bf16[64,64], index: 5, kind: input, shape index: {}]   ;;  %s545_s2 = inlined_call_operand.vmem [shape: f32[1,128], index: 2, kind: input, shape index: {}]   ;;  %s546_s4 = inlined_call_operand.vmem [shape: f32[1,64], index: 4, kind: input, shape index: {}]   ;;  %s547_s8 = inlined_call_operand.<no memory space> [shape: f32[1,1], index: 8, kind: input, shape index: {}]   ;;  %s548_s6 = inlined_call_operand.vmem [shape: f32[1,64], index: 6, kind: input, shape index: {}]   ;;  %s549_s7 = inlined_call_operand.vmem [shape: f32[1,64], index: 7, kind: input, shape index: {}]   ;;  %s550_s9 = inlined_call_operand.vmem [shape: f32[16,1], index: 9, kind: output, shape index: {}]  }
   0x1   :  { %367 = vmatprep.subr.bf16.mxu0 %v420_v0  ;;  %v407_v1 = vld [vmem:[%s541_s1] sm:$0xff]   ;;  %369 = vmatprep.mubr.msk.bf16.mxu0 %vm421_vm0, %v420_v0  ;;  %v36_v3 = vld [vmem:[%s542_s0 + $0x8] sm:$0xff]  ;;  %v410_v7 = vld [vmem:[%s543_s3 + $0x10] sm:$0xff]   ;;  %v14_v35 = vstv %s547_s8  ;;  %vm324_vm3 = vcmask 7168  }
   0x2   :  { %v35_v2 = vld [vmem:[%s542_s0] sm:$0xff]  ;;  %373 = vmatprep.subr.bf16.mxu1 %v420_v0  ;;  %389 = vmatprep.mubr.msk.bf16.mxu1 %vm421_vm0, %v420_v0  ;;  %v409_v6 = vld [vmem:[%s543_s3 + $0x8] sm:$0xff]   ;;  %v411_v8 = vld [vmem:[%s543_s3 + $0x18] sm:$0xff]   ;;  %15 = vst [vmem:[#allocation2] sm:$0x1] %v14_v35 }
   0x3   :  { %368 = vmatpush3.bf16.msra.mxu0 %v407_v1  ;;  %v37_v4 = vpack.c.bf16 %v36_v3, %v35_v2  ;;  %v408_v5 = vld [vmem:[%s543_s3] sm:$0xff]   ;;  %v413_v10 = vld [vmem:[%s543_s3 + $0x28] sm:$0xff]   ;;  %v414_v11 = vld [vmem:[%s543_s3 + $0x30] sm:$0xff]  }
   0x4   :  { %393 = vmatprep.subr.bf16.mxu0 %v420_v0  ;;  %374 = vmatpush3.bf16.msra.mxu1 %v408_v5  ;;  %v412_v9 = vld [vmem:[%s543_s3 + $0x20] sm:$0xff]   ;;  %v415_v12 = vld [vmem:[%s543_s3 + $0x38] sm:$0xff]   ;;  %v417_v14 = vld [vmem:[%s544_s5 + $0x8] sm:$0xff]  }
   0x5   :  { %375 = vmatprep.subr.bf16.mxu1 %v420_v0  ;;  %v416_v13 = vld [vmem:[%s544_s5] sm:$0xff]   ;;  %v418_v25 = vld [vmem:[%s544_s5 + $0x10] sm:$0xff]   ;;  %v419_v26 = vld [vmem:[%s544_s5 + $0x18] sm:$0xff]  }
   0x6   :  { %370 = vmatmul.mubr.msk.bf16.vlgmr.msra.gmra.mrb[0].mxu0 %vm53_vm1, %v37_v4  ;;  %v331_v15 = vld [vmem:[%s545_s2] ss:$0 sm:$0xff] }
   0x7   :  { %401 = vmatprep.mubr.msk.bf16.mxu0 %vm421_vm0, %v420_v0  ;;  %394 = vmatpush3.bf16.msra.mxu0 %v416_v13  ;;  %v334_v27 = vld [vmem:[%s546_s4] ss:$0 sm:$0xff] }
   0x8   :  { %376 = vmatpush3.bf16.msra.mxu1 %v409_v6  ;;  %395 = vmatprep.subr.bf16.mxu0 %v420_v0  ;;  %v343_v36 = vld [vmem:[%s548_s6] ss:$0 sm:$0xff] }
   0x9   :  { %377 = vmatprep.subr.bf16.mxu1 %v420_v0  ;;  %v349_v41 = vld [vmem:[%s549_s7] ss:$0 sm:$0xff] }
   0xa   :  { %v350_v50 = vld [vmem:[#allocation2] ss:$0 sm:$0xff] }
   0xb   :  { %396 = vmatpush3.bf16.msra.mxu0 %v417_v14 }
   0xc   :  { %378 = vmatpush3.bf16.msra.mxu1 %v410_v7  ;;  %397 = vmatprep.subr.bf16.mxu0 %v420_v0 }
   0xd   :  { %379 = vmatprep.subr.bf16.mxu1 %v420_v0 }
   0xf   :  { %398 = vmatpush3.bf16.msra.mxu0 %v418_v25 }
  0x10   :  { %380 = vmatpush3.bf16.msra.mxu1 %v411_v8  ;;  %399 = vmatprep.subr.bf16.mxu0 %v420_v0 }
  0x11   :  { %381 = vmatprep.subr.bf16.mxu1 %v420_v0 }
  0x13   :  { %400 = vmatpush3.bf16.msra.mxu0 %v419_v26 }
  0x14   :  { %382 = vmatpush3.bf16.msra.mxu1 %v412_v9 }
  0x15   :  { %383 = vmatprep.subr.bf16.mxu1 %v420_v0 }
  0x18   :  { %384 = vmatpush3.bf16.msra.mxu1 %v413_v10 }
  0x19   :  { %385 = vmatprep.subr.bf16.mxu1 %v420_v0 }
  0x1c   :  { %386 = vmatpush3.bf16.msra.mxu1 %v414_v11 }
  0x1d   :  { %387 = vmatprep.subr.bf16.mxu1 %v420_v0 }
  0x20   :  { %388 = vmatpush3.bf16.msra.mxu1 %v415_v12 }
  0xd9   :  { %v91_v16 = vpop.f32.mrb[0].mxu0 }
  0xda   :  { %v92_v17 = vadd.f32 %v331_v15, %v91_v16  ;;  %v371_v18 = vpop.f32.mrb[1].mxu0 }
  0xdb   :  { %v94_v19 = vpop.f32.mrb[2].mxu0 }
  0xdc   :  { %v95_v20 = vadd.f32 %v331_v15, %v94_v19  ;;  %v372_v21 = vpop.f32.mrb[3].mxu0  ;;  %v98_v22 = vmax.f32 %v92_v17, 0.0 }
  0xde   :  { %v99_v23 = vmax.f32 %v95_v20, 0.0 }
  0xe0   :  { %v100_v24 = vpack.c.bf16 %v99_v23, %v98_v22 }
  0xe2   :  { %390 = vmatmul.mubr.bf16.vlgmr.msra.gmra.mrb[0].mxu1 %v100_v24 }
 0x1b5   :  { %v206_v28 = vpop.f32.mrb[0].mxu1 }
 0x1b6   :  { %v391_v29 = vpop.f32.mrb[1].mxu1  ;;  %v207_v31 = vadd.f32 %v334_v27, %v206_v28 }
 0x1b7   :  { %v209_v30 = vpop.f32.mrb[2].mxu1 }
 0x1b8   :  { %v210_v32 = vadd.f32 %v334_v27, %v209_v30  ;;  %v392_v33 = vpop.f32.mrb[3].mxu1 }
 0x1ba   :  { %v213_v34 = vpack.c.bf16 %v210_v32, %v207_v31 }
 0x1bc   :  { %402 = vmatmul.mubr.msk.bf16.vlgmr.msra.gmra.mrb[4].mxu0 %vm253_vm2, %v213_v34 }
 0x28f   :  { %v291_v37 = vpop.f32.mrb[4].mxu0 }
 0x290   :  { %v292_v38 = vadd.f32 %v343_v36, %v291_v37  ;;  %v403_v39 = vpop.f32.mrb[5].mxu0 }
 0x291   :  { %v294_v40 = vpop.f32.mrb[6].mxu0 }
 0x292   :  { %v298_v42 = vmax.f32 %v292_v38, 0.0  ;;  %v295_v43 = vadd.f32 %v343_v36, %v294_v40  ;;  %v404_v44 = vpop.f32.mrb[7].mxu0 }
 0x294   :  { %v299_v45 = vmax.f32 %v295_v43, 0.0  ;;  %v307_v46 = vmul.f32 %v349_v41, %v298_v42 }
 0x296   :  { %v309_v47 = vsel %vm253_vm2, %v307_v46, 0.0  ;;  %v308_v48 = vmul.f32 %v349_v41, %v299_v45 }
 0x297   :  { %310 = vadd.xlane.f32.xlu0 %v309_v47 }
 0x298   :  { %v312_v49 = vsel %vm253_vm2, %v308_v48, 0.0 }
 0x29b   :  { %313 = vadd.xlane.f32.xlu0 %v312_v49 }
 0x324   :  { %v311_v51 = vpop.xlane.xlu0 %310 }
 0x325   :  { %v322_v52 = vadd.f32 %v350_v50, %v311_v51 }
 0x327   :  { %325 = vst.msk [vmem:[%s550_s9] sm:$0xff] %vm324_vm3, %v322_v52 }
 0x328   :  { %v314_v53 = vpop.xlane.xlu0 %313 }
 0x329   :  { %v323_v54 = vadd.f32 %v350_v50, %v314_v53 }
 0x32b   :  { %326 = vst.msk [vmem:[%s550_s9 + $0x8] sm:$0xff] %vm324_vm3, %v323_v54 }

</bundles_post_ra>
